<compile_context>
chip_gen: v6e
topology: v6e:2x2x1
jax: 0.10.0
libtpu: 0.0.40
codegen_flags: <defaults>
</compile_context>

<pallas_src>
import math
from functools import partial

import jax
import jax.numpy as jnp
from jax.experimental import pallas as pl
from jax.experimental.pallas import tpu as pltpu  # noqa: F401  (TPU backend)


# ---------------- architecture constants (Config defaults) -------------------
F_IN = 10          # Config.in_features
H1 = 20            # in_features * hidden_dim_mult[0]
H2 = 20            # in_features * hidden_dim_mult[1]
N_CLASS = 1

B_PAD = 128        # batch padded onto the lane axis (one full lane group)
X_ROWS = 16        # input slab rows: rows [0,10) = X^T, row 10 = y (train only)

# Parameter slab layout (single (72,128) f32 array == one input DMA).
# Row starts are 8-aligned so the static ref slices stay sublane-aligned.
_W1_R0 = 0         # rows [ 0,20), cols [0,10): W1 (H1, F_IN)   torch layout
_W2_R0 = 24        # rows [24,44), cols [0,20): W2 (H2, H1)
_VEC_R0 = 48       # rows [48,68): column vectors:
#                    col 0: b1 (H1,1)  col 1: b2 (H2,1)  col 2: W3^T (H2,1)
#                    [row 48, col 3]:  b3 (scalar)
_SLAB_ROWS = 72
_SLAB_COLS = 128


# ----------------------------- Pallas kernels --------------------------------

def _fma_matmul(w, xt):
    """(OUT, K) @ (K, B) via unrolled VPU broadcast-FMA (K <= 20, static).

    Avoids the MXU for these tiny contractions: a handful of broadcast
    mul+adds on otherwise-idle VALU/XLU slots beats two dependent systolic
    fill/drain latencies.
    """
    k_dim = w.shape[1]
    acc = w[:, 0:1] * xt[0:1, :]
    for k in range(1, k_dim):
        acc = acc + w[:, k:k + 1] * xt[k:k + 1, :]
    return acc


def _mlp_core(p_ref, xt):
    """Transposed MLP body: xt is (F_IN, B_PAD); returns logits (1, B_PAD)."""
    w1 = p_ref[_W1_R0:_W1_R0 + H1, 0:F_IN]        # (H1, F_IN)
    w2 = p_ref[_W2_R0:_W2_R0 + H2, 0:H1]          # (H2, H1)
    b1 = p_ref[_VEC_R0:_VEC_R0 + H1, 0:1]         # (H1, 1)
    b2 = p_ref[_VEC_R0:_VEC_R0 + H2, 1:2]         # (H2, 1)
    w3 = p_ref[_VEC_R0:_VEC_R0 + H2, 2:3]         # (H2, 1) == W3^T
    b3 = p_ref[_VEC_R0:_VEC_R0 + 1, 3:4]          # (1, 1)

    h = jnp.maximum(_fma_matmul(w1, xt) + b1, 0.0)    # (H1, B_PAD), ReLU
    h = jnp.maximum(_fma_matmul(w2, h) + b2, 0.0)     # (H2, B_PAD), ReLU
    # Final (hidden -> 1): VPU multiply + sublane reduce -> lane-dense row.
    logits = jnp.sum(h * w3, axis=0, keepdims=True) + b3   # (1, B_PAD)
    return logits


def _mlp_fwd_kernel(x_ref, p_ref, out_ref):
    """Inference path: sigmoid probabilities as a (1, B_PAD) row."""
    logits = _mlp_core(p_ref, x_ref[0:F_IN, :])
    out_ref[...] = jax.nn.sigmoid(logits).astype(out_ref.dtype)


def _mlp_fwd_bce_kernel(xy_ref, p_ref, out_ref, *, batch):
    """Training path: probabilities + mean BCE, fused in one kernel.

    Output row layout: lanes [0, batch) = probabilities, lane `batch` = loss.
    """
    logits = _mlp_core(p_ref, xy_ref[0:F_IN, :])          # (1, B_PAD)
    probs = jax.nn.sigmoid(logits)
    y = xy_ref[F_IN:F_IN + 1, :]                          # (1, B_PAD)

    # BCE in logit space (stable softplus form), log terms clamped at -100 to
    # match torch.nn.functional.binary_cross_entropy exactly.
    sp = jnp.log(1.0 + jnp.exp(-jnp.abs(logits)))         # softplus(-|z|)
    log_p = jnp.maximum(jnp.minimum(logits, 0.0) - sp, -100.0)     # log(p)
    log_1mp = jnp.maximum(jnp.minimum(-logits, 0.0) - sp, -100.0)  # log(1-p)
    bce = -(y * log_p + (1.0 - y) * log_1mp)

    lane = jax.lax.broadcasted_iota(jnp.int32, (1, B_PAD), 1)
    bce = jnp.where(lane < batch, bce, 0.0)               # mask padded lanes
    loss = jnp.sum(bce, axis=1, keepdims=True) * (1.0 / batch)     # (1, 1)

    # Pack the scalar loss into spare lane `batch` of the probability row.
    out_ref[...] = jnp.where(lane == batch, loss, probs).astype(out_ref.dtype)


# ------------------------------ JAX wrappers ---------------------------------

def _full_spec(a):
    nd = a.ndim
    return pl.BlockSpec(a.shape, lambda: (0,) * nd)


def _pack_x(x, y=None):
    """Build the (X_ROWS, B_PAD) input slab: X^T in rows [0,10), y in row 10."""
    b, f = x.shape
    assert f == F_IN and b < B_PAD
    xy = jnp.zeros((X_ROWS, B_PAD), jnp.float32)
    xy = xy.at[0:f, 0:b].set(x.T.astype(jnp.float32))
    if y is not None:
        xy = xy.at[F_IN, 0:b].set(y.reshape(-1).astype(jnp.float32))
    return xy


def mlp_forward(x, param_slab):
    """x: (B, in_features) f32.  Returns probabilities (B, 1) f32."""
    b = x.shape[0]
    xy = _pack_x(x)
    row = pl.pallas_call(
        _mlp_fwd_kernel,
        out_shape=jax.ShapeDtypeStruct((1, B_PAD), jnp.float32),
        grid=(),
        in_specs=[_full_spec(xy), _full_spec(param_slab)],
        out_specs=pl.BlockSpec((1, B_PAD), lambda: (0, 0)),
    )(xy, param_slab)
    return row[0, 0:b].reshape(b, 1)


def mlp_forward_with_bce(x, y, param_slab):
    """Fused forward + BCE.  Returns (probabilities (B,1), scalar loss)."""
    b = x.shape[0]
    xy = _pack_x(x, y)
    row = pl.pallas_call(
        partial(_mlp_fwd_bce_kernel, batch=b),
        out_shape=jax.ShapeDtypeStruct((1, B_PAD), jnp.float32),
        grid=(),
        in_specs=[_full_spec(xy), _full_spec(param_slab)],
        out_specs=pl.BlockSpec((1, B_PAD), lambda: (0, 0)),
    )(xy, param_slab)
    return row[0, 0:b].reshape(b, 1), row[0, b]


def model_forward(x, param_slab, y=None):
    """Mirrors Model.forward: returns (out, loss)."""
    if y is None:
        return mlp_forward(x, param_slab), None
    # TODO(synk): l1/l2 regularization loss (Config defaults l1 == l2 == 0 -> inactive).
    return mlp_forward_with_bce(x, y, param_slab)


# -------------------------- deterministic init / packing ---------------------

def init_params(key, in_features=10, hidden_dim_mult=(2, 2), n_class=1):
    """PyTorch nn.Linear default init: U(-1/sqrt(fan_in), 1/sqrt(fan_in)).
    Weights kept in torch layout (out_features, in_features)."""
    dims = [in_features] + [in_features * m for m in hidden_dim_mult] + [n_class]
    params = []
    for in_ft, out_ft in zip(dims[:-1], dims[1:]):
        key, kw, kb = jax.random.split(key, 3)
        bound = 1.0 / math.sqrt(in_ft)
        w = jax.random.uniform(kw, (out_ft, in_ft), jnp.float32, -bound, bound)
        b = jax.random.uniform(kb, (out_ft,), jnp.float32, -bound, bound)
        params.extend([w, b])
    return tuple(params)   # (w1, b1, w2, b2, w3, b3)


def pack_params(params):
    """Pack all six parameter tensors into one (72, 128) f32 slab (one DMA)."""
    w1, b1, w2, b2, w3, b3 = params
    assert w1.shape == (H1, F_IN) and w2.shape == (H2, H1)
    assert w3.shape == (N_CLASS, H2) and N_CLASS == 1
    slab = jnp.zeros((_SLAB_ROWS, _SLAB_COLS), jnp.float32)
    slab = slab.at[_W1_R0:_W1_R0 + H1, 0:F_IN].set(w1)
    slab = slab.at[_W2_R0:_W2_R0 + H2, 0:H1].set(w2)
    slab = slab.at[_VEC_R0:_VEC_R0 + H1, 0].set(b1.reshape(-1))
    slab = slab.at[_VEC_R0:_VEC_R0 + H2, 1].set(b2.reshape(-1))
    slab = slab.at[_VEC_R0:_VEC_R0 + H2, 2].set(w3.reshape(-1))
    slab = slab.at[_VEC_R0, 3].set(b3.reshape(-1)[0])
    return slab


# ---------------------------------- main --------------------------------------

if __name__ == "__main__":
    key = jax.random.PRNGKey(0)
    k_param, k_x, k_y = jax.random.split(key, 3)

    batch = 50          # Config.batch_size
    in_features = 10    # Config.in_features

    params = init_params(k_param, in_features=in_features,
                         hidden_dim_mult=(2, 2), n_class=1)
    slab = pack_params(params)

    x = jax.random.normal(k_x, (batch, in_features), jnp.float32)
    y = (jax.random.uniform(k_y, (batch,)) > 0.5).astype(jnp.float32)

    # training path (fused forward + BCE in a single pallas_call)
    out, loss = model_forward(x, slab, y)
    out = jax.block_until_ready(out)
    loss = jax.block_until_ready(loss)

    # eval path (no targets)
    out_eval, loss_eval = model_forward(x, slab)
    out_eval = jax.block_until_ready(out_eval)

    # pure-JAX reference (torch semantics)
    w1, b1, w2, b2, w3, b3 = params
    h = jnp.maximum(x @ w1.T + b1, 0.0)
    h = jnp.maximum(h @ w2.T + b2, 0.0)
    p_ref = jax.nn.sigmoid(h @ w3.T + b3)
    log_p = jnp.maximum(jnp.log(p_ref), -100.0)
    log_1mp = jnp.maximum(jnp.log(1.0 - p_ref), -100.0)
    yc = y.reshape(-1, 1)
    loss_ref = jnp.mean(-(yc * log_p + (1.0 - yc) * log_1mp))

    assert out.shape == (batch, 1)
    assert bool(jnp.all((out >= 0.0) & (out <= 1.0)))
    assert loss_eval is None
    assert bool(jnp.isfinite(loss))
    assert bool(jnp.allclose(out, out_eval, atol=1e-6))
    assert bool(jnp.allclose(out, p_ref, atol=1e-5))
    assert bool(jnp.allclose(loss, loss_ref, atol=1e-4))

    print("KERNEL_OK")
</pallas_src>

<mosaic_0001>
module attributes {stable_mosaic.version = 11 : i64} {
  func.func @_mlp_fwd_bce_kernel(%arg0: memref<16x128xf32, #tpu.memory_space<vmem>>, %arg1: memref<72x128xf32, #tpu.memory_space<vmem>>, %arg2: memref<1x128xf32, #tpu.memory_space<vmem>>) attributes {dimension_semantics = [], scalar_prefetch = 0 : i64, scratch_operands = 0 : i64, tpu.core_type = #tpu.core_type<tc>} {
    %c0 = arith.constant 0 : index
    %c0_0 = arith.constant 0 : index
    %0 = vector.load %arg0[%c0, %c0_0] : memref<16x128xf32, #tpu.memory_space<vmem>>, vector<10x128xf32>
    %c0_1 = arith.constant 0 : index
    %c0_2 = arith.constant 0 : index
    %1 = vector.load %arg1[%c0_1, %c0_2] : memref<72x128xf32, #tpu.memory_space<vmem>>, vector<20x10xf32>
    %c24 = arith.constant 24 : index
    %c0_3 = arith.constant 0 : index
    %2 = vector.load %arg1[%c24, %c0_3] : memref<72x128xf32, #tpu.memory_space<vmem>>, vector<20x20xf32>
    %c48 = arith.constant 48 : index
    %c0_4 = arith.constant 0 : index
    %3 = vector.load %arg1[%c48, %c0_4] : memref<72x128xf32, #tpu.memory_space<vmem>>, vector<20x1xf32>
    %c48_5 = arith.constant 48 : index
    %c1 = arith.constant 1 : index
    %4 = vector.load %arg1[%c48_5, %c1] : memref<72x128xf32, #tpu.memory_space<vmem>>, vector<20x1xf32>
    %c48_6 = arith.constant 48 : index
    %c2 = arith.constant 2 : index
    %5 = vector.load %arg1[%c48_6, %c2] : memref<72x128xf32, #tpu.memory_space<vmem>>, vector<20x1xf32>
    %c48_7 = arith.constant 48 : index
    %c3 = arith.constant 3 : index
    %6 = vector.load %arg1[%c48_7, %c3] : memref<72x128xf32, #tpu.memory_space<vmem>>, vector<1x1xf32>
    %7 = vector.extract_strided_slice %1 {offsets = [0, 0], sizes = [20, 1], strides = [1, 1]} : vector<20x10xf32> to vector<20x1xf32>
    %8 = vector.extract_strided_slice %0 {offsets = [0, 0], sizes = [1, 128], strides = [1, 1]} : vector<10x128xf32> to vector<1x128xf32>
    %9 = vector.broadcast %7 : vector<20x1xf32> to vector<20x128xf32>
    %10 = vector.broadcast %8 : vector<1x128xf32> to vector<20x128xf32>
    %11 = arith.mulf %9, %10 : vector<20x128xf32>
    %12 = vector.extract_strided_slice %1 {offsets = [0, 1], sizes = [20, 1], strides = [1, 1]} : vector<20x10xf32> to vector<20x1xf32>
    %13 = vector.extract_strided_slice %0 {offsets = [1, 0], sizes = [1, 128], strides = [1, 1]} : vector<10x128xf32> to vector<1x128xf32>
    %14 = vector.broadcast %12 : vector<20x1xf32> to vector<20x128xf32>
    %15 = vector.broadcast %13 : vector<1x128xf32> to vector<20x128xf32>
    %16 = arith.mulf %14, %15 : vector<20x128xf32>
    %17 = arith.addf %11, %16 : vector<20x128xf32>
    %18 = vector.extract_strided_slice %1 {offsets = [0, 2], sizes = [20, 1], strides = [1, 1]} : vector<20x10xf32> to vector<20x1xf32>
    %19 = vector.extract_strided_slice %0 {offsets = [2, 0], sizes = [1, 128], strides = [1, 1]} : vector<10x128xf32> to vector<1x128xf32>
    %20 = vector.broadcast %18 : vector<20x1xf32> to vector<20x128xf32>
    %21 = vector.broadcast %19 : vector<1x128xf32> to vector<20x128xf32>
    %22 = arith.mulf %20, %21 : vector<20x128xf32>
    %23 = arith.addf %17, %22 : vector<20x128xf32>
    %24 = vector.extract_strided_slice %1 {offsets = [0, 3], sizes = [20, 1], strides = [1, 1]} : vector<20x10xf32> to vector<20x1xf32>
    %25 = vector.extract_strided_slice %0 {offsets = [3, 0], sizes = [1, 128], strides = [1, 1]} : vector<10x128xf32> to vector<1x128xf32>
    %26 = vector.broadcast %24 : vector<20x1xf32> to vector<20x128xf32>
    %27 = vector.broadcast %25 : vector<1x128xf32> to vector<20x128xf32>
    %28 = arith.mulf %26, %27 : vector<20x128xf32>
    %29 = arith.addf %23, %28 : vector<20x128xf32>
    %30 = vector.extract_strided_slice %1 {offsets = [0, 4], sizes = [20, 1], strides = [1, 1]} : vector<20x10xf32> to vector<20x1xf32>
    %31 = vector.extract_strided_slice %0 {offsets = [4, 0], sizes = [1, 128], strides = [1, 1]} : vector<10x128xf32> to vector<1x128xf32>
    %32 = vector.broadcast %30 : vector<20x1xf32> to vector<20x128xf32>
    %33 = vector.broadcast %31 : vector<1x128xf32> to vector<20x128xf32>
    %34 = arith.mulf %32, %33 : vector<20x128xf32>
    %35 = arith.addf %29, %34 : vector<20x128xf32>
    %36 = vector.extract_strided_slice %1 {offsets = [0, 5], sizes = [20, 1], strides = [1, 1]} : vector<20x10xf32> to vector<20x1xf32>
    %37 = vector.extract_strided_slice %0 {offsets = [5, 0], sizes = [1, 128], strides = [1, 1]} : vector<10x128xf32> to vector<1x128xf32>
    %38 = vector.broadcast %36 : vector<20x1xf32> to vector<20x128xf32>
    %39 = vector.broadcast %37 : vector<1x128xf32> to vector<20x128xf32>
    %40 = arith.mulf %38, %39 : vector<20x128xf32>
    %41 = arith.addf %35, %40 : vector<20x128xf32>
    %42 = vector.extract_strided_slice %1 {offsets = [0, 6], sizes = [20, 1], strides = [1, 1]} : vector<20x10xf32> to vector<20x1xf32>
    %43 = vector.extract_strided_slice %0 {offsets = [6, 0], sizes = [1, 128], strides = [1, 1]} : vector<10x128xf32> to vector<1x128xf32>
    %44 = vector.broadcast %42 : vector<20x1xf32> to vector<20x128xf32>
    %45 = vector.broadcast %43 : vector<1x128xf32> to vector<20x128xf32>
    %46 = arith.mulf %44, %45 : vector<20x128xf32>
    %47 = arith.addf %41, %46 : vector<20x128xf32>
    %48 = vector.extract_strided_slice %1 {offsets = [0, 7], sizes = [20, 1], strides = [1, 1]} : vector<20x10xf32> to vector<20x1xf32>
    %49 = vector.extract_strided_slice %0 {offsets = [7, 0], sizes = [1, 128], strides = [1, 1]} : vector<10x128xf32> to vector<1x128xf32>
    %50 = vector.broadcast %48 : vector<20x1xf32> to vector<20x128xf32>
    %51 = vector.broadcast %49 : vector<1x128xf32> to vector<20x128xf32>
    %52 = arith.mulf %50, %51 : vector<20x128xf32>
    %53 = arith.addf %47, %52 : vector<20x128xf32>
    %54 = vector.extract_strided_slice %1 {offsets = [0, 8], sizes = [20, 1], strides = [1, 1]} : vector<20x10xf32> to vector<20x1xf32>
    %55 = vector.extract_strided_slice %0 {offsets = [8, 0], sizes = [1, 128], strides = [1, 1]} : vector<10x128xf32> to vector<1x128xf32>
    %56 = vector.broadcast %54 : vector<20x1xf32> to vector<20x128xf32>
    %57 = vector.broadcast %55 : vector<1x128xf32> to vector<20x128xf32>
    %58 = arith.mulf %56, %57 : vector<20x128xf32>
    %59 = arith.addf %53, %58 : vector<20x128xf32>
    %60 = vector.extract_strided_slice %1 {offsets = [0, 9], sizes = [20, 1], strides = [1, 1]} : vector<20x10xf32> to vector<20x1xf32>
    %61 = vector.extract_strided_slice %0 {offsets = [9, 0], sizes = [1, 128], strides = [1, 1]} : vector<10x128xf32> to vector<1x128xf32>
    %62 = vector.broadcast %60 : vector<20x1xf32> to vector<20x128xf32>
    %63 = vector.broadcast %61 : vector<1x128xf32> to vector<20x128xf32>
    %64 = arith.mulf %62, %63 : vector<20x128xf32>
    %65 = arith.addf %59, %64 : vector<20x128xf32>
    %66 = vector.broadcast %3 : vector<20x1xf32> to vector<20x128xf32>
    %67 = arith.addf %65, %66 : vector<20x128xf32>
    %cst = arith.constant 0.000000e+00 : f32
    %68 = vector.broadcast %cst : f32 to vector<20x128xf32>
    %69 = arith.maximumf %67, %68 : vector<20x128xf32>
    %70 = vector.extract_strided_slice %2 {offsets = [0, 0], sizes = [20, 1], strides = [1, 1]} : vector<20x20xf32> to vector<20x1xf32>
    %71 = vector.extract_strided_slice %69 {offsets = [0, 0], sizes = [1, 128], strides = [1, 1]} : vector<20x128xf32> to vector<1x128xf32>
    %72 = vector.broadcast %70 : vector<20x1xf32> to vector<20x128xf32>
    %73 = vector.broadcast %71 : vector<1x128xf32> to vector<20x128xf32>
    %74 = arith.mulf %72, %73 : vector<20x128xf32>
    %75 = vector.extract_strided_slice %2 {offsets = [0, 1], sizes = [20, 1], strides = [1, 1]} : vector<20x20xf32> to vector<20x1xf32>
    %76 = vector.extract_strided_slice %69 {offsets = [1, 0], sizes = [1, 128], strides = [1, 1]} : vector<20x128xf32> to vector<1x128xf32>
    %77 = vector.broadcast %75 : vector<20x1xf32> to vector<20x128xf32>
    %78 = vector.broadcast %76 : vector<1x128xf32> to vector<20x128xf32>
    %79 = arith.mulf %77, %78 : vector<20x128xf32>
    %80 = arith.addf %74, %79 : vector<20x128xf32>
    %81 = vector.extract_strided_slice %2 {offsets = [0, 2], sizes = [20, 1], strides = [1, 1]} : vector<20x20xf32> to vector<20x1xf32>
    %82 = vector.extract_strided_slice %69 {offsets = [2, 0], sizes = [1, 128], strides = [1, 1]} : vector<20x128xf32> to vector<1x128xf32>
    %83 = vector.broadcast %81 : vector<20x1xf32> to vector<20x128xf32>
    %84 = vector.broadcast %82 : vector<1x128xf32> to vector<20x128xf32>
    %85 = arith.mulf %83, %84 : vector<20x128xf32>
    %86 = arith.addf %80, %85 : vector<20x128xf32>
    %87 = vector.extract_strided_slice %2 {offsets = [0, 3], sizes = [20, 1], strides = [1, 1]} : vector<20x20xf32> to vector<20x1xf32>
    %88 = vector.extract_strided_slice %69 {offsets = [3, 0], sizes = [1, 128], strides = [1, 1]} : vector<20x128xf32> to vector<1x128xf32>
    %89 = vector.broadcast %87 : vector<20x1xf32> to vector<20x128xf32>
    %90 = vector.broadcast %88 : vector<1x128xf32> to vector<20x128xf32>
    %91 = arith.mulf %89, %90 : vector<20x128xf32>
    %92 = arith.addf %86, %91 : vector<20x128xf32>
    %93 = vector.extract_strided_slice %2 {offsets = [0, 4], sizes = [20, 1], strides = [1, 1]} : vector<20x20xf32> to vector<20x1xf32>
    %94 = vector.extract_strided_slice %69 {offsets = [4, 0], sizes = [1, 128], strides = [1, 1]} : vector<20x128xf32> to vector<1x128xf32>
    %95 = vector.broadcast %93 : vector<20x1xf32> to vector<20x128xf32>
    %96 = vector.broadcast %94 : vector<1x128xf32> to vector<20x128xf32>
    %97 = arith.mulf %95, %96 : vector<20x128xf32>
    %98 = arith.addf %92, %97 : vector<20x128xf32>
    %99 = vector.extract_strided_slice %2 {offsets = [0, 5], sizes = [20, 1], strides = [1, 1]} : vector<20x20xf32> to vector<20x1xf32>
    %100 = vector.extract_strided_slice %69 {offsets = [5, 0], sizes = [1, 128], strides = [1, 1]} : vector<20x128xf32> to vector<1x128xf32>
    %101 = vector.broadcast %99 : vector<20x1xf32> to vector<20x128xf32>
    %102 = vector.broadcast %100 : vector<1x128xf32> to vector<20x128xf32>
    %103 = arith.mulf %101, %102 : vector<20x128xf32>
    %104 = arith.addf %98, %103 : vector<20x128xf32>
    %105 = vector.extract_strided_slice %2 {offsets = [0, 6], sizes = [20, 1], strides = [1, 1]} : vector<20x20xf32> to vector<20x1xf32>
    %106 = vector.extract_strided_slice %69 {offsets = [6, 0], sizes = [1, 128], strides = [1, 1]} : vector<20x128xf32> to vector<1x128xf32>
    %107 = vector.broadcast %105 : vector<20x1xf32> to vector<20x128xf32>
    %108 = vector.broadcast %106 : vector<1x128xf32> to vector<20x128xf32>
    %109 = arith.mulf %107, %108 : vector<20x128xf32>
    %110 = arith.addf %104, %109 : vector<20x128xf32>
    %111 = vector.extract_strided_slice %2 {offsets = [0, 7], sizes = [20, 1], strides = [1, 1]} : vector<20x20xf32> to vector<20x1xf32>
    %112 = vector.extract_strided_slice %69 {offsets = [7, 0], sizes = [1, 128], strides = [1, 1]} : vector<20x128xf32> to vector<1x128xf32>
    %113 = vector.broadcast %111 : vector<20x1xf32> to vector<20x128xf32>
    %114 = vector.broadcast %112 : vector<1x128xf32> to vector<20x128xf32>
    %115 = arith.mulf %113, %114 : vector<20x128xf32>
    %116 = arith.addf %110, %115 : vector<20x128xf32>
    %117 = vector.extract_strided_slice %2 {offsets = [0, 8], sizes = [20, 1], strides = [1, 1]} : vector<20x20xf32> to vector<20x1xf32>
    %118 = vector.extract_strided_slice %69 {offsets = [8, 0], sizes = [1, 128], strides = [1, 1]} : vector<20x128xf32> to vector<1x128xf32>
    %119 = vector.broadcast %117 : vector<20x1xf32> to vector<20x128xf32>
    %120 = vector.broadcast %118 : vector<1x128xf32> to vector<20x128xf32>
    %121 = arith.mulf %119, %120 : vector<20x128xf32>
    %122 = arith.addf %116, %121 : vector<20x128xf32>
    %123 = vector.extract_strided_slice %2 {offsets = [0, 9], sizes = [20, 1], strides = [1, 1]} : vector<20x20xf32> to vector<20x1xf32>
    %124 = vector.extract_strided_slice %69 {offsets = [9, 0], sizes = [1, 128], strides = [1, 1]} : vector<20x128xf32> to vector<1x128xf32>
    %125 = vector.broadcast %123 : vector<20x1xf32> to vector<20x128xf32>
    %126 = vector.broadcast %124 : vector<1x128xf32> to vector<20x128xf32>
    %127 = arith.mulf %125, %126 : vector<20x128xf32>
    %128 = arith.addf %122, %127 : vector<20x128xf32>
    %129 = vector.extract_strided_slice %2 {offsets = [0, 10], sizes = [20, 1], strides = [1, 1]} : vector<20x20xf32> to vector<20x1xf32>
    %130 = vector.extract_strided_slice %69 {offsets = [10, 0], sizes = [1, 128], strides = [1, 1]} : vector<20x128xf32> to vector<1x128xf32>
    %131 = vector.broadcast %129 : vector<20x1xf32> to vector<20x128xf32>
    %132 = vector.broadcast %130 : vector<1x128xf32> to vector<20x128xf32>
    %133 = arith.mulf %131, %132 : vector<20x128xf32>
    %134 = arith.addf %128, %133 : vector<20x128xf32>
    %135 = vector.extract_strided_slice %2 {offsets = [0, 11], sizes = [20, 1], strides = [1, 1]} : vector<20x20xf32> to vector<20x1xf32>
    %136 = vector.extract_strided_slice %69 {offsets = [11, 0], sizes = [1, 128], strides = [1, 1]} : vector<20x128xf32> to vector<1x128xf32>
    %137 = vector.broadcast %135 : vector<20x1xf32> to vector<20x128xf32>
    %138 = vector.broadcast %136 : vector<1x128xf32> to vector<20x128xf32>
    %139 = arith.mulf %137, %138 : vector<20x128xf32>
    %140 = arith.addf %134, %139 : vector<20x128xf32>
    %141 = vector.extract_strided_slice %2 {offsets = [0, 12], sizes = [20, 1], strides = [1, 1]} : vector<20x20xf32> to vector<20x1xf32>
    %142 = vector.extract_strided_slice %69 {offsets = [12, 0], sizes = [1, 128], strides = [1, 1]} : vector<20x128xf32> to vector<1x128xf32>
    %143 = vector.broadcast %141 : vector<20x1xf32> to vector<20x128xf32>
    %144 = vector.broadcast %142 : vector<1x128xf32> to vector<20x128xf32>
    %145 = arith.mulf %143, %144 : vector<20x128xf32>
    %146 = arith.addf %140, %145 : vector<20x128xf32>
    %147 = vector.extract_strided_slice %2 {offsets = [0, 13], sizes = [20, 1], strides = [1, 1]} : vector<20x20xf32> to vector<20x1xf32>
    %148 = vector.extract_strided_slice %69 {offsets = [13, 0], sizes = [1, 128], strides = [1, 1]} : vector<20x128xf32> to vector<1x128xf32>
    %149 = vector.broadcast %147 : vector<20x1xf32> to vector<20x128xf32>
    %150 = vector.broadcast %148 : vector<1x128xf32> to vector<20x128xf32>
    %151 = arith.mulf %149, %150 : vector<20x128xf32>
    %152 = arith.addf %146, %151 : vector<20x128xf32>
    %153 = vector.extract_strided_slice %2 {offsets = [0, 14], sizes = [20, 1], strides = [1, 1]} : vector<20x20xf32> to vector<20x1xf32>
    %154 = vector.extract_strided_slice %69 {offsets = [14, 0], sizes = [1, 128], strides = [1, 1]} : vector<20x128xf32> to vector<1x128xf32>
    %155 = vector.broadcast %153 : vector<20x1xf32> to vector<20x128xf32>
    %156 = vector.broadcast %154 : vector<1x128xf32> to vector<20x128xf32>
    %157 = arith.mulf %155, %156 : vector<20x128xf32>
    %158 = arith.addf %152, %157 : vector<20x128xf32>
    %159 = vector.extract_strided_slice %2 {offsets = [0, 15], sizes = [20, 1], strides = [1, 1]} : vector<20x20xf32> to vector<20x1xf32>
    %160 = vector.extract_strided_slice %69 {offsets = [15, 0], sizes = [1, 128], strides = [1, 1]} : vector<20x128xf32> to vector<1x128xf32>
    %161 = vector.broadcast %159 : vector<20x1xf32> to vector<20x128xf32>
    %162 = vector.broadcast %160 : vector<1x128xf32> to vector<20x128xf32>
    %163 = arith.mulf %161, %162 : vector<20x128xf32>
    %164 = arith.addf %158, %163 : vector<20x128xf32>
    %165 = vector.extract_strided_slice %2 {offsets = [0, 16], sizes = [20, 1], strides = [1, 1]} : vector<20x20xf32> to vector<20x1xf32>
    %166 = vector.extract_strided_slice %69 {offsets = [16, 0], sizes = [1, 128], strides = [1, 1]} : vector<20x128xf32> to vector<1x128xf32>
    %167 = vector.broadcast %165 : vector<20x1xf32> to vector<20x128xf32>
    %168 = vector.broadcast %166 : vector<1x128xf32> to vector<20x128xf32>
    %169 = arith.mulf %167, %168 : vector<20x128xf32>
    %170 = arith.addf %164, %169 : vector<20x128xf32>
    %171 = vector.extract_strided_slice %2 {offsets = [0, 17], sizes = [20, 1], strides = [1, 1]} : vector<20x20xf32> to vector<20x1xf32>
    %172 = vector.extract_strided_slice %69 {offsets = [17, 0], sizes = [1, 128], strides = [1, 1]} : vector<20x128xf32> to vector<1x128xf32>
    %173 = vector.broadcast %171 : vector<20x1xf32> to vector<20x128xf32>
    %174 = vector.broadcast %172 : vector<1x128xf32> to vector<20x128xf32>
    %175 = arith.mulf %173, %174 : vector<20x128xf32>
    %176 = arith.addf %170, %175 : vector<20x128xf32>
    %177 = vector.extract_strided_slice %2 {offsets = [0, 18], sizes = [20, 1], strides = [1, 1]} : vector<20x20xf32> to vector<20x1xf32>
    %178 = vector.extract_strided_slice %69 {offsets = [18, 0], sizes = [1, 128], strides = [1, 1]} : vector<20x128xf32> to vector<1x128xf32>
    %179 = vector.broadcast %177 : vector<20x1xf32> to vector<20x128xf32>
    %180 = vector.broadcast %178 : vector<1x128xf32> to vector<20x128xf32>
    %181 = arith.mulf %179, %180 : vector<20x128xf32>
    %182 = arith.addf %176, %181 : vector<20x128xf32>
    %183 = vector.extract_strided_slice %2 {offsets = [0, 19], sizes = [20, 1], strides = [1, 1]} : vector<20x20xf32> to vector<20x1xf32>
    %184 = vector.extract_strided_slice %69 {offsets = [19, 0], sizes = [1, 128], strides = [1, 1]} : vector<20x128xf32> to vector<1x128xf32>
    %185 = vector.broadcast %183 : vector<20x1xf32> to vector<20x128xf32>
    %186 = vector.broadcast %184 : vector<1x128xf32> to vector<20x128xf32>
    %187 = arith.mulf %185, %186 : vector<20x128xf32>
    %188 = arith.addf %182, %187 : vector<20x128xf32>
    %189 = vector.broadcast %4 : vector<20x1xf32> to vector<20x128xf32>
    %190 = arith.addf %188, %189 : vector<20x128xf32>
    %cst_8 = arith.constant 0.000000e+00 : f32
    %191 = vector.broadcast %cst_8 : f32 to vector<20x128xf32>
    %192 = arith.maximumf %190, %191 : vector<20x128xf32>
    %193 = vector.broadcast %5 : vector<20x1xf32> to vector<20x128xf32>
    %194 = arith.mulf %192, %193 : vector<20x128xf32>
    %cst_9 = arith.constant dense<0.000000e+00> : vector<128xf32>
    %195 = vector.multi_reduction <add>, %194, %cst_9 [0] : vector<20x128xf32> to vector<128xf32>
    %196 = vector.shape_cast %195 : vector<128xf32> to vector<1x128xf32>
    %197 = vector.broadcast %6 : vector<1x1xf32> to vector<1x128xf32>
    %198 = arith.addf %196, %197 : vector<1x128xf32>
    %199 = arith.negf %198 : vector<1x128xf32>
    %200 = math.exp %199 : vector<1x128xf32>
    %cst_10 = arith.constant 1.000000e+00 : f32
    %201 = vector.broadcast %cst_10 : f32 to vector<1x128xf32>
    %202 = arith.addf %201, %200 : vector<1x128xf32>
    %203 = arith.divf %201, %202 : vector<1x128xf32>
    %c10 = arith.constant 10 : index
    %c0_11 = arith.constant 0 : index
    %204 = vector.load %arg0[%c10, %c0_11] : memref<16x128xf32, #tpu.memory_space<vmem>>, vector<1x128xf32>
    %205 = math.absf %198 : vector<1x128xf32>
    %cst_12 = arith.constant 0.000000e+00 : f32
    %206 = vector.broadcast %cst_12 : f32 to vector<1x128xf32>
    %207 = arith.subf %206, %205 : vector<1x128xf32>
    %208 = math.exp %207 : vector<1x128xf32>
    %cst_13 = arith.constant 1.000000e+00 : f32
    %209 = vector.broadcast %cst_13 : f32 to vector<1x128xf32>
    %210 = arith.addf %209, %208 : vector<1x128xf32>
    %211 = math.log %210 : vector<1x128xf32>
    %cst_14 = arith.constant 0.000000e+00 : f32
    %212 = vector.broadcast %cst_14 : f32 to vector<1x128xf32>
    %213 = arith.minimumf %198, %212 : vector<1x128xf32>
    %214 = arith.subf %213, %211 : vector<1x128xf32>
    %cst_15 = arith.constant -1.000000e+02 : f32
    %215 = vector.broadcast %cst_15 : f32 to vector<1x128xf32>
    %216 = arith.maximumf %214, %215 : vector<1x128xf32>
    %cst_16 = arith.constant 0.000000e+00 : f32
    %217 = vector.broadcast %cst_16 : f32 to vector<1x128xf32>
    %218 = arith.subf %217, %198 : vector<1x128xf32>
    %cst_17 = arith.constant 0.000000e+00 : f32
    %219 = vector.broadcast %cst_17 : f32 to vector<1x128xf32>
    %220 = arith.minimumf %218, %219 : vector<1x128xf32>
    %221 = arith.subf %220, %211 : vector<1x128xf32>
    %cst_18 = arith.constant -1.000000e+02 : f32
    %222 = vector.broadcast %cst_18 : f32 to vector<1x128xf32>
    %223 = arith.maximumf %221, %222 : vector<1x128xf32>
    %224 = arith.mulf %204, %216 : vector<1x128xf32>
    %cst_19 = arith.constant 1.000000e+00 : f32
    %225 = vector.broadcast %cst_19 : f32 to vector<1x128xf32>
    %226 = arith.subf %225, %204 : vector<1x128xf32>
    %227 = arith.mulf %226, %223 : vector<1x128xf32>
    %228 = arith.addf %224, %227 : vector<1x128xf32>
    %cst_20 = arith.constant 0.000000e+00 : f32
    %229 = vector.broadcast %cst_20 : f32 to vector<1x128xf32>
    %230 = arith.subf %229, %228 : vector<1x128xf32>
    %231 = tpu.iota {dimensions = array<i32: 1>} : vector<1x128xi32>
    %c50_i32 = arith.constant 50 : i32
    %232 = vector.broadcast %c50_i32 : i32 to vector<1x128xi32>
    %233 = arith.cmpi slt, %231, %232 : vector<1x128xi32>
    %cst_21 = arith.constant 0.000000e+00 : f32
    %234 = vector.broadcast %cst_21 : f32 to vector<1x128xf32>
    %235 = arith.select %233, %230, %234 : vector<1x128xi1>, vector<1x128xf32>
    %cst_22 = arith.constant dense<0.000000e+00> : vector<1xf32>
    %236 = vector.multi_reduction <add>, %235, %cst_22 [1] : vector<1x128xf32> to vector<1xf32>
    %237 = vector.shape_cast %236 : vector<1xf32> to vector<1x1xf32>
    %cst_23 = arith.constant 2.000000e-02 : f32
    %238 = vector.broadcast %cst_23 : f32 to vector<1x1xf32>
    %239 = arith.mulf %237, %238 : vector<1x1xf32>
    %c50_i32_24 = arith.constant 50 : i32
    %240 = vector.broadcast %c50_i32_24 : i32 to vector<1x128xi32>
    %241 = arith.cmpi eq, %231, %240 : vector<1x128xi32>
    %242 = vector.shape_cast %239 : vector<1x1xf32> to vector<1x1xf32>
    %243 = vector.broadcast %242 : vector<1x1xf32> to vector<1x128xf32>
    %244 = arith.select %241, %243, %203 : vector<1x128xi1>, vector<1x128xf32>
    %c0_25 = arith.constant 0 : index
    %c0_26 = arith.constant 0 : index
    %245 = vector.load %arg2[%c0_25, %c0_26] : memref<1x128xf32, #tpu.memory_space<vmem>>, vector<1x128xf32>
    tpu.vector_store %arg2[%c0_25, %c0_26], %244 {strides = array<i32>} : memref<1x128xf32, #tpu.memory_space<vmem>>, vector<1x128xf32>,
    return
  }
}

</mosaic_0001>

<bundles_post_ra>
// kernel: tpu_custom_call.1
= control target key start
LH: loop header
LB: loop body
LE: loop exit
PB: predicated region body
PF: predicated region fallthrough
CT: control target
= control target key end

     0   :  { %7 = vsyncpa [#allocation3], 0  ;;  %s1428_s0 = inlined_call_operand.hbm [shape: f32[16,128], index: 0, kind: input, shape index: {}]   ;;  %s1429_s1 = inlined_call_operand.hbm [shape: f32[72,128], index: 1, kind: input, shape index: {}]   ;;  %s1430_s2 = inlined_call_operand.hbm [shape: f32[1,128], index: 2, kind: output, shape index: {}]  }
   0x1   :  { %8 = vsyncpa [#allocation6], 0 }
   0x2   :  { %9 = vsyncpa [#allocation4], 0  ;;  %s991_s9 = smov [#allocation2]  }
   0x3   :  { %s15_s10 = sshll.u32 %s991_s9, 4  ;;  %s16_s10 = int_to_ptr.vmem [resolvable:$true] %s15_s10 }
   0x4   :  { %s933_s11 = scalar_lea.vmem %s16_s10, 256  ;;  %p938_p1 = scmp.lt.s32.totalorder %s16_s10, %s16_s10 }
   0x5   :  { %p934_p0 = scmp.ne.s32.totalorder %s16_s10, %s933_s11  ;;  %p939_p2 = scmp.lt.s32.totalorder %s933_s11, %s933_s11 }
   0x7   :  { %p940_p3 = por %p939_p2, %p938_p1 }
   0x9   :  { %p941_p4 = pnand %p940_p3, %p934_p0 }
   0xb   :  { %944 = shalt.err (!%p941_p4)
}
   0xc   :  { %s992_s12 = smov 128   ;;  %s993_s13 = smov 8  }
   0xd   :  { %21 = dma.hbm_to_vmem [thread:$0]  %s1428_s0, 256, %s16_s10, [#allocation3], %s992_s12, %s992_s12, %s993_s13  }
   0xe   :  { %s994_s16 = smov [#allocation5]  }
   0xf   :  { %s27_s17 = sshll.u32 %s994_s16, 4  ;;  %s28_s17 = int_to_ptr.vmem [resolvable:$true] %s27_s17 }
  0x10   :  { %s953_s18 = scalar_lea.vmem %s28_s17, 1152  ;;  %p958_p6 = scmp.lt.s32.totalorder %s28_s17, %s28_s17 }
  0x11   :  { %p954_p5 = scmp.ne.s32.totalorder %s28_s17, %s953_s18  ;;  %p959_p7 = scmp.lt.s32.totalorder %s953_s18, %s953_s18 }
  0x13   :  { %p960_p8 = por %p959_p7, %p958_p6 }
  0x15   :  { %p961_p9 = pnand %p960_p8, %p954_p5 }
  0x17   :  { %964 = shalt.err (!%p961_p9)
}
  0x18   :  { %33 = dma.hbm_to_vmem [thread:$0]  %s1429_s1, 1152, %s28_s17, [#allocation6], %s992_s12, %s992_s12, %s993_s13  }
  0x19   :  { %985 = dma.done.wait [#allocation3], 256  }
  0x1a   :  { %986 = vsyncadd [#allocation3], 4294967040 }
  0x1b   :  { %987 = dma.done.wait [#allocation6], 1152  }
  0x1c   :  { %988 = vsyncadd [#allocation6], 4294966144  ;;  %v995_v0 = vmov 0   ;;  %v1039_v1 = vld [vmem:[#allocation5 + $0x10] sm:$0xf]  ;;  %v1041_v2 = vld [vmem:[#allocation5] sm:$0xff]  ;;  %v1431_v49 = vlaneseq }
  0x1d   :  { %863 = vset.pattern.permute.xlu1 %v995_v0  ;;  %862 = vset.pattern.permute.xlu0 %v995_v0  ;;  %v1045_v3 = vld [vmem:[#allocation5 + $0x8] sm:$0xff]  ;;  %v1433_v4 = vmov 1   ;;  %v1050_v5 = vld [vmem:[#allocation5 + $0x38] sm:$0xff]  ;;  %v1054_v6 = vld [vmem:[#allocation5 + $0x20] sm:$0xff]  ;;  %v1432_v7 = vmov 2   ;;  %v998_v9 = vmov 3  }
  0x1e   :  { %64 = vperm.xlu1 %863, %v1039_v1   ;;  %54 = vperm.xlu0 %862, %v1041_v2   ;;  %v1062_v8 = vld [vmem:[#allocation5 + $0x18] sm:$0xff]  ;;  %v999_v10 = vmov 4   ;;  %v1000_v11 = vmov 5   ;;  %v1001_v12 = vmov 6   ;;  %v1002_v13 = vmov 7   ;;  %v1106_v16 = vld [vmem:[#allocation5 + $0x30] sm:$0xff] }
  0x1f   :  { %v1003_v14 = vmov 8   ;;  %v1004_v15 = vmov 9   ;;  %v1111_v17 = vld [vmem:[#allocation5 + $0x40] sm:$0xf]  ;;  %v1118_v18 = vld [vmem:[#allocation5 + $0x28] sm:$0xf] }
  0x20   :  { %v1005_v19 = vmov 10   ;;  %v1006_v20 = vmov 11   ;;  %v1007_v21 = vmov 12   ;;  %v1008_v22 = vmov 13   ;;  %v40_v57 = vld [vmem:[#allocation2] sm:$0xff]  ;;  %s1015_s0 = smov [#allocation7]  }
  0x21   :  { %v1009_v23 = vmov 14   ;;  %v1438_v24 = vmov 15   ;;  %v1437_v27 = vmov 16   ;;  %v1436_v32 = vmov 17   ;;  %v51_v63 = vld [vmem:[#allocation5 + $0x30] sm:$0x1] }
  0x22   :  { %864 = vset.pattern.permute.xlu1 %v1433_v4  ;;  %59 = vperm.xlu0 %862, %v1045_v3   ;;  %v1435_v35 = vmov 18   ;;  %v1434_v38 = vmov 19   ;;  %v68_v52 = vshrl.u32 %v1431_v49, 7  ;;  %vm767_vm0 = vcmask 1043456   ;;  %s826_s1 = sshll.u32 %s1015_s0, 4  ;;  %s827_s1 = int_to_ptr.vmem [resolvable:$true] %s826_s1 }
  0x23   :  { %75 = vperm.xlu1 %864, %v1041_v2   ;;  %vm812_vm2 = vcmask 1040384   ;;  %s965_s21 = scalar_lea.vmem %s827_s1, 16  ;;  %s969_s22 = scalar_lea.vmem %s827_s1, 32 }
  0x24   :  { %v1209_v54 = vsub.s32 0, %v68_v52  ;;  %v1211_v55 = vsub.s32 1, %v68_v52  ;;  %v1219_v61 = vsub.s32 2, %v68_v52  ;;  %v1237_v49 = vsub.s32 5, %v68_v52  ;;  %p966_p10 = scmp.ne.s32.totalorder %s827_s1, %s965_s21  ;;  %p970_p11 = scmp.lt.s32.totalorder %s827_s1, %s827_s1 }
  0x25   :  { %p971_p12 = scmp.lt.s32.totalorder %s969_s22, %s965_s21 }
  0x26   :  { %279 = vperm.xlu0 %862, %v1050_v5   ;;  %v70_v59 = vrot.slane %v40_v57, %v1209_v54  ;;  %v89_v60 = vrot.slane %v40_v57, %v1211_v55 }
  0x27   :  { %83 = vperm.xlu1 %864, %v1039_v1   ;;  %p972_p13 = por %p971_p12, %p970_p11 }
  0x29   :  { %p973_p0 = pnand %p972_p13, %p966_p10 }
  0x2a   :  { %300 = vperm.xlu0 %862, %v1054_v6  }
  0x2b   :  { %865 = vset.pattern.permute.xlu1 %v1432_v7 }
  0x2c   :  { %97 = vperm.xlu1 %865, %v1041_v2  }
  0x2e   :  { %874 = vset.pattern.permute.xlu0 %v1433_v4 }
  0x2f   :  { %79 = vperm.xlu0 %874, %v1045_v3  }
  0x30   :  { %105 = vperm.xlu1 %865, %v1039_v1  }
  0x33   :  { %316 = vperm.xlu0 %874, %v1062_v8  }
  0x34   :  { %866 = vset.pattern.permute.xlu1 %v998_v9 }
  0x35   :  { %119 = vperm.xlu1 %866, %v1041_v2  }
  0x37   :  { %875 = vset.pattern.permute.xlu0 %v1432_v7 }
  0x38   :  { %101 = vperm.xlu0 %875, %v1045_v3  }
  0x39   :  { %127 = vperm.xlu1 %866, %v1039_v1  }
  0x3c   :  { %338 = vperm.xlu0 %875, %v1062_v8  }
  0x3d   :  { %867 = vset.pattern.permute.xlu1 %v999_v10 }
  0x3e   :  { %141 = vperm.xlu1 %867, %v1041_v2  }
  0x40   :  { %877 = vset.pattern.permute.xlu0 %v998_v9 }
  0x41   :  { %123 = vperm.xlu0 %877, %v1045_v3  }
  0x42   :  { %149 = vperm.xlu1 %867, %v1039_v1  }
  0x45   :  { %360 = vperm.xlu0 %877, %v1062_v8  }
  0x46   :  { %868 = vset.pattern.permute.xlu1 %v1000_v11 }
  0x47   :  { %163 = vperm.xlu1 %868, %v1041_v2  }
  0x49   :  { %879 = vset.pattern.permute.xlu0 %v999_v10 }
  0x4a   :  { %145 = vperm.xlu0 %879, %v1045_v3  }
  0x4b   :  { %171 = vperm.xlu1 %868, %v1039_v1  }
  0x4e   :  { %382 = vperm.xlu0 %879, %v1062_v8  }
  0x4f   :  { %869 = vset.pattern.permute.xlu1 %v1001_v12 }
  0x50   :  { %185 = vperm.xlu1 %869, %v1041_v2  }
  0x52   :  { %881 = vset.pattern.permute.xlu0 %v1000_v11 }
  0x53   :  { %167 = vperm.xlu0 %881, %v1045_v3  }
  0x54   :  { %193 = vperm.xlu1 %869, %v1039_v1  }
  0x57   :  { %404 = vperm.xlu0 %881, %v1062_v8  }
  0x58   :  { %870 = vset.pattern.permute.xlu1 %v1002_v13 }
  0x59   :  { %207 = vperm.xlu1 %870, %v1041_v2  }
  0x5b   :  { %883 = vset.pattern.permute.xlu0 %v1001_v12 }
  0x5c   :  { %189 = vperm.xlu0 %883, %v1045_v3  }
  0x5d   :  { %215 = vperm.xlu1 %870, %v1039_v1  }
  0x60   :  { %426 = vperm.xlu0 %883, %v1062_v8  }
  0x61   :  { %871 = vset.pattern.permute.xlu1 %v1003_v14 }
  0x62   :  { %229 = vperm.xlu1 %871, %v1041_v2  }
  0x64   :  { %885 = vset.pattern.permute.xlu0 %v1002_v13 }
  0x65   :  { %211 = vperm.xlu0 %885, %v1045_v3  }
  0x66   :  { %237 = vperm.xlu1 %871, %v1039_v1  }
  0x69   :  { %448 = vperm.xlu0 %885, %v1062_v8  }
  0x6a   :  { %872 = vset.pattern.permute.xlu1 %v1004_v15 }
  0x6b   :  { %251 = vperm.xlu1 %872, %v1041_v2  }
  0x6d   :  { %887 = vset.pattern.permute.xlu0 %v1003_v14 }
  0x6e   :  { %233 = vperm.xlu0 %887, %v1045_v3  }
  0x6f   :  { %259 = vperm.xlu1 %872, %v1039_v1  }
  0x72   :  { %470 = vperm.xlu0 %887, %v1062_v8  }
  0x73   :  { %873 = vset.pattern.permute.xlu1 %v995_v0 }
  0x74   :  { %274 = vperm.xlu1 %873, %v1106_v16  }
  0x76   :  { %889 = vset.pattern.permute.xlu0 %v1004_v15 }
  0x77   :  { %255 = vperm.xlu0 %889, %v1045_v3   ;;  %v111_v3 = vrot.slane %v40_v57, %v1219_v61 }
  0x78   :  { %284 = vperm.xlu1 %873, %v1111_v17  }
  0x7b   :  { %492 = vperm.xlu0 %889, %v1062_v8  }
  0x7c   :  { %295 = vperm.xlu1 %873, %v1062_v8  }
  0x7f   :  { %892 = vset.pattern.permute.xlu0 %v1005_v19 }
  0x80   :  { %305 = vperm.xlu1 %873, %v1118_v18   ;;  %514 = vperm.xlu0 %892, %v1062_v8  }
  0x84   :  { %876 = vset.pattern.permute.xlu1 %v1433_v4  ;;  %894 = vset.pattern.permute.xlu0 %v1006_v20 }
  0x85   :  { %320 = vperm.xlu1 %876, %v1054_v6   ;;  %536 = vperm.xlu0 %894, %v1062_v8  }
  0x89   :  { %324 = vperm.xlu1 %876, %v1118_v18   ;;  %896 = vset.pattern.permute.xlu0 %v1007_v21 }
  0x8a   :  { %558 = vperm.xlu0 %896, %v1062_v8  }
  0x8d   :  { %878 = vset.pattern.permute.xlu1 %v1432_v7 }
  0x8e   :  { %342 = vperm.xlu1 %878, %v1054_v6   ;;  %898 = vset.pattern.permute.xlu0 %v1008_v22 }
  0x8f   :  { %580 = vperm.xlu0 %898, %v1062_v8  }
  0x92   :  { %346 = vperm.xlu1 %878, %v1118_v18  }
  0x93   :  { %900 = vset.pattern.permute.xlu0 %v1009_v23 }
  0x94   :  { %602 = vperm.xlu0 %900, %v1062_v8  }
  0x96   :  { %880 = vset.pattern.permute.xlu1 %v998_v9 }
  0x97   :  { %364 = vperm.xlu1 %880, %v1054_v6  }
  0x98   :  { %902 = vset.pattern.permute.xlu0 %v1438_v24 }
  0x99   :  { %v1140_v25 = vpop.permute.xlu1 %64  ;;  %624 = vperm.xlu0 %902, %v1062_v8   ;;  %v1143_v26 = vpop.permute.xlu0 %54 }
  0x9b   :  { %368 = vperm.xlu1 %880, %v1118_v18  }
  0x9d   :  { %904 = vset.pattern.permute.xlu0 %v1437_v27  ;;  %v1147_v28 = vpop.permute.xlu0 %59 }
  0x9e   :  { %v1149_v29 = vpop.permute.xlu1 %75  ;;  %646 = vperm.xlu0 %904, %v1062_v8   ;;  %v72_v0 = vmul.f32 %v70_v59, %v1147_v28 }
  0x9f   :  { %882 = vset.pattern.permute.xlu1 %v999_v10 }
  0xa0   :  { %386 = vperm.xlu1 %882, %v1054_v6  }
  0xa1   :  { %v1154_v30 = vpop.permute.xlu0 %279 }
  0xa2   :  { %v1156_v31 = vpop.permute.xlu1 %83  ;;  %906 = vset.pattern.permute.xlu0 %v1436_v32 }
  0xa3   :  { %668 = vperm.xlu0 %906, %v1062_v8  }
  0xa4   :  { %390 = vperm.xlu1 %882, %v1118_v18  }
  0xa5   :  { %v1161_v33 = vpop.permute.xlu0 %300 }
  0xa7   :  { %v1163_v34 = vpop.permute.xlu1 %97  ;;  %908 = vset.pattern.permute.xlu0 %v1435_v35 }
  0xa8   :  { %884 = vset.pattern.permute.xlu1 %v1000_v11  ;;  %690 = vperm.xlu0 %908, %v1062_v8  }
  0xa9   :  { %408 = vperm.xlu1 %884, %v1054_v6  }
  0xaa   :  { %v80_v36 = vpop.permute.xlu0 %79 }
  0xab   :  { %v1169_v37 = vpop.permute.xlu1 %105  ;;  %v91_v1 = vmul.f32 %v89_v60, %v80_v36  ;;  %v90_v36 = vmul.f32 %v89_v60, %v1149_v29 }
  0xac   :  { %910 = vset.pattern.permute.xlu0 %v1434_v38  ;;  %v177_v38 = vrot.slane %v40_v57, %v1237_v49 }
  0xad   :  { %412 = vperm.xlu1 %884, %v1118_v18   ;;  %712 = vperm.xlu0 %910, %v1062_v8   ;;  %v1228_v8 = vsub.s32 3, %v68_v52  ;;  %v94_v10 = vadd.f32 %v91_v1, %v72_v0  ;;  %v112_v1 = vmul.f32 %v111_v3, %v1163_v34  ;;  %v73_v34 = vmul.f32 %v70_v59, %v1140_v25 }
  0xae   :  { %v1174_v39 = vpop.permute.xlu0 %316 }
  0xb0   :  { %v1176_v40 = vpop.permute.xlu1 %119 }
  0xb1   :  { %886 = vset.pattern.permute.xlu1 %v1001_v12  ;;  %912 = vset.pattern.permute.xlu0 %v1433_v4  ;;  %v133_v12 = vrot.slane %v40_v57, %v1228_v8 }
  0xb2   :  { %430 = vperm.xlu1 %886, %v1054_v6   ;;  %734 = vperm.xlu0 %912, %v1106_v16  }
  0xb3   :  { %v102_v41 = vpop.permute.xlu0 %101 }
  0xb4   :  { %v1182_v42 = vpop.permute.xlu1 %127  ;;  %v113_v11 = vmul.f32 %v111_v3, %v102_v41  ;;  %v1241_v41 = vsub.s32 6, %v68_v52 }
  0xb5   :  { %v136_v27 = vmul.f32 %v133_v12, %v1182_v42 }
  0xb6   :  { %434 = vperm.xlu1 %886, %v1118_v18   ;;  %914 = vset.pattern.permute.xlu0 %v1432_v7  ;;  %v199_v35 = vrot.slane %v40_v57, %v1241_v41 }
  0xb7   :  { %752 = vperm.xlu0 %914, %v1106_v16   ;;  %v1187_v43 = vpop.permute.xlu0 %338  ;;  %v116_v16 = vadd.f32 %v113_v11, %v94_v10  ;;  %v1246_v10 = vsub.s32 7, %v68_v52  ;;  %v134_v11 = vmul.f32 %v133_v12, %v1176_v40 }
  0xb9   :  { %v1189_v44 = vpop.permute.xlu1 %141  ;;  %v221_v40 = vrot.slane %v40_v57, %v1246_v10 }
  0xba   :  { %888 = vset.pattern.permute.xlu1 %v1002_v13  ;;  %v1233_v13 = vsub.s32 4, %v68_v52 }
  0xbb   :  { %452 = vperm.xlu1 %888, %v1054_v6   ;;  %916 = vset.pattern.permute.xlu0 %v998_v9 }
  0xbc   :  { %v124_v45 = vpop.permute.xlu0 %123  ;;  %778 = vperm.xlu0 %916, %v51_v63   ;;  %v71_v63 = vmul.f32 %v70_v59, %v1143_v26  ;;  %v92_v26 = vmul.f32 %v89_v60, %v1156_v31 }
  0xbd   :  { %v1194_v46 = vpop.permute.xlu1 %149  ;;  %v135_v28 = vmul.f32 %v133_v12, %v124_v45 }
  0xbe   :  { %v93_v29 = vadd.f32 %v90_v36, %v71_v63  ;;  %v95_v32 = vadd.f32 %v92_v26, %v73_v34 }
  0xbf   :  { %456 = vperm.xlu1 %888, %v1118_v18   ;;  %v138_v7 = vadd.f32 %v135_v28, %v116_v16  ;;  %v41_v28 = vld [vmem:[#allocation2 + $0x8] sm:$0x3] }
  0xc0   :  { %v1197_v47 = vpop.permute.xlu0 %360  ;;  %v115_v16 = vadd.f32 %v112_v1, %v93_v29  ;;  %v243_v25 = vrot.slane %v41_v28, %v1209_v54 }
  0xc2   :  { %v1199_v48 = vpop.permute.xlu1 %163 }
  0xc3   :  { %890 = vset.pattern.permute.xlu1 %v1003_v14  ;;  %v178_v24 = vmul.f32 %v177_v38, %v1199_v48 }
  0xc4   :  { %474 = vperm.xlu1 %890, %v1054_v6  }
  0xc5   :  { %v146_v50 = vpop.permute.xlu0 %145 }
  0xc6   :  { %v1203_v51 = vpop.permute.xlu1 %171 }
  0xc7   :  { %v180_v48 = vmul.f32 %v177_v38, %v1203_v51 }
  0xc8   :  { %478 = vperm.xlu1 %890, %v1118_v18  }
  0xc9   :  { %v1207_v53 = vpop.permute.xlu0 %382 }
  0xcb   :  { %v1213_v56 = vpop.permute.xlu1 %185 }
  0xcc   :  { %891 = vset.pattern.permute.xlu1 %v1004_v15 }
  0xcd   :  { %496 = vperm.xlu1 %891, %v1054_v6  }
  0xce   :  { %v168_v58 = vpop.permute.xlu0 %167 }
  0xcf   :  { %v1221_v62 = vpop.permute.xlu1 %193  ;;  %v179_v60 = vmul.f32 %v177_v38, %v168_v58 }
  0xd1   :  { %500 = vperm.xlu1 %891, %v1118_v18  }
  0xd2   :  { %v1225_v2 = vpop.permute.xlu0 %404 }
  0xd4   :  { %v208_v9 = vpop.permute.xlu1 %207 }
  0xd5   :  { %893 = vset.pattern.permute.xlu1 %v1005_v19  ;;  %v155_v19 = vrot.slane %v40_v57, %v1233_v13  ;;  %v222_v12 = vmul.f32 %v221_v40, %v208_v9 }
  0xd6   :  { %518 = vperm.xlu1 %893, %v1054_v6  }
  0xd7   :  { %v190_v14 = vpop.permute.xlu0 %189  ;;  %v157_v4 = vmul.f32 %v155_v19, %v146_v50  ;;  %v114_v50 = vmul.f32 %v111_v3, %v1169_v37  ;;  %v156_v52 = vmul.f32 %v155_v19, %v1189_v44  ;;  %v158_v44 = vmul.f32 %v155_v19, %v1194_v46 }
  0xd8   :  { %v216_v15 = vpop.permute.xlu1 %215  ;;  %v201_v58 = vmul.f32 %v199_v35, %v190_v14  ;;  %v265_v3 = vrot.slane %v41_v28, %v1211_v55  ;;  %v202_v46 = vmul.f32 %v199_v35, %v1221_v62 }
  0xd9   :  { %v160_v31 = vadd.f32 %v157_v4, %v138_v7  ;;  %v117_v37 = vadd.f32 %v114_v50, %v95_v32  ;;  %v200_v4 = vmul.f32 %v199_v35, %v1213_v56 }
  0xda   :  { %522 = vperm.xlu1 %893, %v1118_v18  }
  0xdb   :  { %v1243_v0 = vpop.permute.xlu0 %426  ;;  %v182_v57 = vadd.f32 %v179_v60, %v160_v31  ;;  %v139_v1 = vadd.f32 %v136_v27, %v117_v37  ;;  %v224_v27 = vmul.f32 %v221_v40, %v216_v15 }
  0xdd   :  { %v230_v45 = vpop.permute.xlu1 %229  ;;  %v161_v32 = vadd.f32 %v158_v44, %v139_v1  ;;  %v204_v56 = vadd.f32 %v201_v58, %v182_v57 }
  0xde   :  { %895 = vset.pattern.permute.xlu1 %v1006_v20  ;;  %v137_v20 = vadd.f32 %v134_v11, %v115_v16  ;;  %v244_v19 = vmul.f32 %v243_v25, %v230_v45 }
  0xdf   :  { %540 = vperm.xlu1 %895, %v1054_v6   ;;  %v183_v34 = vadd.f32 %v180_v48, %v161_v32 }
  0xe0   :  { %v212_v36 = vpop.permute.xlu0 %211  ;;  %v159_v59 = vadd.f32 %v156_v52, %v137_v20 }
  0xe1   :  { %v238_v63 = vpop.permute.xlu1 %237  ;;  %v223_v11 = vmul.f32 %v221_v40, %v212_v36  ;;  %v205_v38 = vadd.f32 %v202_v46, %v183_v34 }
  0xe2   :  { %v181_v42 = vadd.f32 %v178_v24, %v159_v59  ;;  %v246_v9 = vmul.f32 %v243_v25, %v238_v63 }
  0xe3   :  { %544 = vperm.xlu1 %895, %v1118_v18   ;;  %v227_v35 = vadd.f32 %v224_v27, %v205_v38 }
  0xe4   :  { %v1264_v7 = vpop.permute.xlu0 %448  ;;  %v203_v26 = vadd.f32 %v200_v4, %v181_v42 }
  0xe5   :  { %v249_v60 = vadd.f32 %v246_v9, %v227_v35  ;;  %v1439_v35 = vmov 15  }
  0xe6   :  { %v252_v29 = vpop.permute.xlu1 %251  ;;  %v225_v16 = vadd.f32 %v222_v12, %v203_v26 }
  0xe7   :  { %897 = vset.pattern.permute.xlu1 %v1007_v21  ;;  %v266_v24 = vmul.f32 %v265_v3, %v252_v29  ;;  %v226_v21 = vadd.f32 %v223_v11, %v204_v56 }
  0xe8   :  { %562 = vperm.xlu1 %897, %v1054_v6   ;;  %v247_v51 = vadd.f32 %v244_v19, %v225_v16 }
  0xe9   :  { %v234_v14 = vpop.permute.xlu0 %233 }
  0xea   :  { %v260_v50 = vpop.permute.xlu1 %259  ;;  %v245_v52 = vmul.f32 %v243_v25, %v234_v14  ;;  %v269_v45 = vadd.f32 %v266_v24, %v247_v51 }
  0xeb   :  { %v268_v62 = vmul.f32 %v265_v3, %v260_v50 }
  0xec   :  { %566 = vperm.xlu1 %897, %v1118_v18   ;;  %v248_v20 = vadd.f32 %v245_v52, %v226_v21 }
  0xed   :  { %v471_v28 = vpop.permute.xlu0 %470  ;;  %v271_v40 = vadd.f32 %v268_v62, %v249_v60 }
  0xef   :  { %v275_v31 = vpop.permute.xlu1 %274 }
  0xf0   :  { %v287_v36 = vadd.f32 %v275_v31, %v269_v45  ;;  %899 = vset.pattern.permute.xlu1 %v1008_v22 }
  0xf1   :  { %584 = vperm.xlu1 %899, %v1054_v6  }
  0xf2   :  { %v290_v15 = vmax.f32 %v287_v36, 0.0  ;;  %v256_v37 = vpop.permute.xlu0 %255 }
  0xf3   :  { %v285_v63 = vpop.permute.xlu1 %284  ;;  %v267_v59 = vmul.f32 %v265_v3, %v256_v37 }
  0xf4   :  { %v1274_v44 = vadd.f32 %v285_v63, %v271_v40  ;;  %v330_v25 = vrot.slane %v290_v15, %v1211_v55  ;;  %v311_v57 = vrot.slane %v290_v15, %v1209_v54  ;;  %v1280_v58 = vrot.slane %v290_v15, %v1219_v61 }
  0xf5   :  { %588 = vperm.xlu1 %899, %v1118_v18   ;;  %v270_v4 = vadd.f32 %v267_v59, %v248_v20  ;;  %v1285_v3 = vrot.slane %v290_v15, %v1228_v8  ;;  %v1292_v26 = vrot.slane %v290_v15, %v1233_v13  ;;  %v1295_v19 = vrot.slane %v290_v15, %v1237_v49 }
  0xf6   :  { %v493_v22 = vpop.permute.xlu0 %492  ;;  %v331_v48 = vmul.f32 %v330_v25, %v1174_v39  ;;  %v353_v32 = vmul.f32 %v1280_v58, %v1187_v43  ;;  %v1302_v34 = vrot.slane %v290_v15, %v1241_v41  ;;  %v1308_v24 = vrot.slane %v290_v15, %v1246_v10 }
  0xf7   :  { %v296_v1 = vpop.permute.xlu1 %295  ;;  %v288_v12 = vadd.f32 %v1154_v30, %v270_v4  ;;  %v397_v43 = vmul.f32 %v1292_v26, %v1207_v53  ;;  %v419_v27 = vmul.f32 %v1295_v19, %v1225_v2  ;;  %v313_v51 = vmul.f32 %v311_v57, %v1161_v33 }
  0xf8   :  { %v312_v42 = vmul.f32 %v311_v57, %v296_v1  ;;  %v441_v21 = vmul.f32 %v1302_v34, %v1243_v0  ;;  %v463_v45 = vmul.f32 %v1308_v24, %v1264_v7 }
  0xf9   :  { %901 = vset.pattern.permute.xlu1 %v1009_v23  ;;  %v291_v56 = vmax.f32 %v288_v12, 0.0  ;;  %v375_v23 = vmul.f32 %v1285_v3, %v1197_v47 }
  0xfa   :  { %v334_v29 = vadd.f32 %v331_v48, %v312_v42  ;;  %606 = vperm.xlu1 %901, %v1054_v6   ;;  %v1440_v42 = vmov 16  }
  0xfb   :  { %v306_v46 = vpop.permute.xlu1 %305  ;;  %v515_v39 = vpop.permute.xlu0 %514  ;;  %v1311_v50 = vrot.slane %v291_v56, %v1209_v54  ;;  %v1317_v52 = vrot.slane %v291_v56, %v1211_v55  ;;  %v1325_v33 = vrot.slane %v291_v56, %v1219_v61  ;;  %v1329_v40 = vrot.slane %v291_v56, %v1228_v8 }
  0xfc   :  { %v356_v30 = vadd.f32 %v353_v32, %v334_v29  ;;  %v314_v11 = vmul.f32 %v311_v57, %v306_v46 }
  0xfd   :  { %v485_v31 = vmul.f32 %v1311_v50, %v471_v28  ;;  %v507_v15 = vmul.f32 %v1317_v52, %v493_v22  ;;  %v529_v7 = vmul.f32 %v1325_v33, %v515_v39  ;;  %v1334_v28 = vrot.slane %v291_v56, %v1233_v13 }
  0xfe   :  { %v378_v14 = vadd.f32 %v375_v23, %v356_v30  ;;  %610 = vperm.xlu1 %901, %v1118_v18   ;;  %v1339_v22 = vrot.slane %v291_v56, %v1237_v49  ;;  %v1345_v13 = vrot.slane %v291_v56, %v1241_v41 }
 0x100   :  { %v400_v16 = vadd.f32 %v397_v43, %v378_v14  ;;  %v321_v47 = vpop.permute.xlu1 %320  ;;  %v537_v38 = vpop.permute.xlu0 %536  ;;  %v1352_v43 = vrot.slane %v291_v56, %v1246_v10 }
 0x101   :  { %v332_v53 = vmul.f32 %v330_v25, %v321_v47  ;;  %v292_v47 = vmax.f32 %v1274_v44, 0.0 }
 0x102   :  { %v422_v9 = vadd.f32 %v419_v27, %v400_v16  ;;  %903 = vset.pattern.permute.xlu1 %v1439_v35 }
 0x103   :  { %v335_v2 = vadd.f32 %v332_v53, %v313_v51  ;;  %628 = vperm.xlu1 %903, %v1054_v6   ;;  %v1441_v51 = vmov 17   ;;  %v1361_v56 = vrot.slane %v292_v47, %v1209_v54 }
 0x104   :  { %v444_v62 = vadd.f32 %v441_v21, %v422_v9  ;;  %v325_v60 = vpop.permute.xlu1 %324 }
 0x105   :  { %v333_v36 = vmul.f32 %v330_v25, %v325_v60  ;;  %v559_v0 = vpop.permute.xlu0 %558  ;;  %v551_v25 = vmul.f32 %v1329_v40, %v537_v38 }
 0x106   :  { %v466_v20 = vadd.f32 %v463_v45, %v444_v62  ;;  %v573_v12 = vmul.f32 %v1334_v28, %v559_v0  ;;  %v1368_v0 = vrot.slane %v292_v47, %v1211_v55 }
 0x107   :  { %v336_v37 = vadd.f32 %v333_v36, %v314_v11  ;;  %632 = vperm.xlu1 %903, %v1118_v18   ;;  %v1442_v36 = vmov 18  }
 0x108   :  { %v488_v63 = vadd.f32 %v485_v31, %v466_v20 }
 0x109   :  { %v343_v59 = vpop.permute.xlu1 %342 }
 0x10a   :  { %v510_v4 = vadd.f32 %v507_v15, %v488_v63  ;;  %v354_v57 = vmul.f32 %v1280_v58, %v343_v59  ;;  %v581_v1 = vpop.permute.xlu0 %580  ;;  %v1375_v59 = vrot.slane %v292_v47, %v1219_v61 }
 0x10b   :  { %905 = vset.pattern.permute.xlu1 %v1440_v42  ;;  %v595_v39 = vmul.f32 %v1339_v22, %v581_v1  ;;  %v1443_v42 = vmov 19  }
 0x10c   :  { %v532_v48 = vadd.f32 %v529_v7, %v510_v4  ;;  %v357_v29 = vadd.f32 %v354_v57, %v335_v2  ;;  %650 = vperm.xlu1 %905, %v1054_v6  }
 0x10d   :  { %v347_v32 = vpop.permute.xlu1 %346 }
 0x10e   :  { %v554_v46 = vadd.f32 %v551_v25, %v532_v48  ;;  %v355_v30 = vmul.f32 %v1280_v58, %v347_v32 }
 0x10f   :  { %v603_v11 = vpop.permute.xlu0 %602 }
 0x110   :  { %v576_v49 = vadd.f32 %v573_v12, %v554_v46  ;;  %v358_v23 = vadd.f32 %v355_v30, %v336_v37  ;;  %654 = vperm.xlu1 %905, %v1118_v18   ;;  %v617_v14 = vmul.f32 %v1345_v13, %v603_v11 }
 0x112   :  { %v598_v16 = vadd.f32 %v595_v39, %v576_v49  ;;  %v365_v27 = vpop.permute.xlu1 %364  ;;  %v1444_v49 = vmov 1  }
 0x113   :  { %v376_v41 = vmul.f32 %v1285_v3, %v365_v27 }
 0x114   :  { %v620_v38 = vadd.f32 %v617_v14, %v598_v16  ;;  %907 = vset.pattern.permute.xlu1 %v1441_v51  ;;  %v625_v58 = vpop.permute.xlu0 %624 }
 0x115   :  { %v379_v53 = vadd.f32 %v376_v41, %v357_v29  ;;  %v639_v9 = vmul.f32 %v1352_v43, %v625_v58  ;;  %672 = vperm.xlu1 %907, %v1054_v6  }
 0x116   :  { %v369_v21 = vpop.permute.xlu1 %368 }
 0x117   :  { %v642_v35 = vadd.f32 %v639_v9, %v620_v38  ;;  %v377_v10 = vmul.f32 %v1285_v3, %v369_v21 }
 0x119   :  { %v380_v2 = vadd.f32 %v377_v10, %v358_v23  ;;  %676 = vperm.xlu1 %907, %v1118_v18   ;;  %v647_v44 = vpop.permute.xlu0 %646 }
 0x11a   :  { %v661_v62 = vmul.f32 %v1361_v56, %v647_v44 }
 0x11b   :  { %v387_v45 = vpop.permute.xlu1 %386 }
 0x11c   :  { %v664_v31 = vadd.f32 %v661_v62, %v642_v35  ;;  %v398_v60 = vmul.f32 %v1292_v26, %v387_v45 }
 0x11d   :  { %909 = vset.pattern.permute.xlu1 %v1442_v36 }
 0x11e   :  { %v401_v20 = vadd.f32 %v398_v60, %v379_v53  ;;  %694 = vperm.xlu1 %909, %v1054_v6   ;;  %v669_v54 = vpop.permute.xlu0 %668 }
 0x11f   :  { %v683_v3 = vmul.f32 %v1368_v0, %v669_v54  ;;  %v391_v15 = vpop.permute.xlu1 %390 }
 0x120   :  { %v399_v37 = vmul.f32 %v1292_v26, %v391_v15  ;;  %v1382_v26 = vrot.slane %v292_v47, %v1228_v8 }
 0x121   :  { %v686_v63 = vadd.f32 %v683_v3, %v664_v31 }
 0x122   :  { %v402_v7 = vadd.f32 %v399_v37, %v380_v2  ;;  %698 = vperm.xlu1 %909, %v1118_v18  }
 0x123   :  { %v691_v4 = vpop.permute.xlu0 %690 }
 0x124   :  { %v705_v55 = vmul.f32 %v1375_v59, %v691_v4  ;;  %v409_v25 = vpop.permute.xlu1 %408 }
 0x125   :  { %v420_v57 = vmul.f32 %v1295_v19, %v409_v25 }
 0x126   :  { %v708_v1 = vadd.f32 %v705_v55, %v686_v63  ;;  %911 = vset.pattern.permute.xlu1 %v1443_v42 }
 0x127   :  { %v423_v48 = vadd.f32 %v420_v57, %v401_v20  ;;  %716 = vperm.xlu1 %911, %v1054_v6  }
 0x128   :  { %v413_v12 = vpop.permute.xlu1 %412  ;;  %v713_v29 = vpop.permute.xlu0 %712 }
 0x129   :  { %v421_v61 = vmul.f32 %v1295_v19, %v413_v12  ;;  %v727_v32 = vmul.f32 %v1382_v26, %v713_v29 }
 0x12b   :  { %v424_v46 = vadd.f32 %v421_v61, %v402_v7  ;;  %720 = vperm.xlu1 %911, %v1118_v18   ;;  %v1387_v39 = vadd.f32 %v727_v32, %v708_v1  ;;  %v1445_v18 = vmov 2  }
 0x12d   :  { %v431_v30 = vpop.permute.xlu1 %430 }
 0x12e   :  { %v442_v11 = vmul.f32 %v1302_v34, %v431_v30 }
 0x12f   :  { %913 = vset.pattern.permute.xlu1 %v1444_v49 }
 0x130   :  { %v445_v6 = vadd.f32 %v442_v11, %v423_v48  ;;  %738 = vperm.xlu1 %913, %v1050_v5  }
 0x131   :  { %v435_v8 = vpop.permute.xlu1 %434 }
 0x132   :  { %v443_v23 = vmul.f32 %v1302_v34, %v435_v8 }
 0x134   :  { %v446_v14 = vadd.f32 %v443_v23, %v424_v46  ;;  %742 = vperm.xlu1 %913, %v1111_v17  }
 0x136   :  { %v453_v19 = vpop.permute.xlu1 %452 }
 0x137   :  { %v464_v16 = vmul.f32 %v1308_v24, %v453_v19 }
 0x138   :  { %915 = vset.pattern.permute.xlu1 %v1445_v18 }
 0x139   :  { %v467_v27 = vadd.f32 %v464_v16, %v445_v6  ;;  %756 = vperm.xlu1 %915, %v1050_v5  }
 0x13a   :  { %v457_v41 = vpop.permute.xlu1 %456 }
 0x13b   :  { %v465_v47 = vmul.f32 %v1308_v24, %v457_v41 }
 0x13d   :  { %v468_v38 = vadd.f32 %v465_v47, %v446_v14  ;;  %760 = vperm.xlu1 %915, %v1111_v17  }
 0x13f   :  { %v475_v51 = vpop.permute.xlu1 %474 }
 0x140   :  { %v486_v34 = vmul.f32 %v1311_v50, %v475_v51 }
 0x142   :  { %v489_v58 = vadd.f32 %v486_v34, %v467_v27 }
 0x143   :  { %v479_v53 = vpop.permute.xlu1 %478 }
 0x144   :  { %v487_v9 = vmul.f32 %v1311_v50, %v479_v53 }
 0x146   :  { %v490_v21 = vadd.f32 %v487_v9, %v468_v38 }
 0x148   :  { %v497_v35 = vpop.permute.xlu1 %496 }
 0x149   :  { %v508_v10 = vmul.f32 %v1317_v52, %v497_v35 }
 0x14b   :  { %v511_v2 = vadd.f32 %v508_v10, %v489_v58 }
 0x14c   :  { %v501_v44 = vpop.permute.xlu1 %500 }
 0x14d   :  { %v509_v5 = vmul.f32 %v1317_v52, %v501_v44 }
 0x14f   :  { %v512_v62 = vadd.f32 %v509_v5, %v490_v21 }
 0x151   :  { %v519_v24 = vpop.permute.xlu1 %518 }
 0x152   :  { %v530_v45 = vmul.f32 %v1325_v33, %v519_v24  ;;  %v735_v24 = vpop.permute.xlu0 %734 }
 0x154   :  { %v533_v17 = vadd.f32 %v530_v45, %v511_v2 }
 0x155   :  { %v523_v31 = vpop.permute.xlu1 %522 }
 0x156   :  { %v531_v60 = vmul.f32 %v1325_v33, %v523_v31 }
 0x158   :  { %v534_v36 = vadd.f32 %v531_v60, %v512_v62 }
 0x15a   :  { %v541_v20 = vpop.permute.xlu1 %540 }
 0x15b   :  { %v552_v50 = vmul.f32 %v1329_v40, %v541_v20 }
 0x15d   :  { %v555_v54 = vadd.f32 %v552_v50, %v533_v17 }
 0x15e   :  { %v545_v3 = vpop.permute.xlu1 %544 }
 0x15f   :  { %v553_v15 = vmul.f32 %v1329_v40, %v545_v3 }
 0x161   :  { %v556_v37 = vadd.f32 %v553_v15, %v534_v36  ;;  %v753_v36 = vpop.permute.xlu0 %752 }
 0x163   :  { %v563_v63 = vpop.permute.xlu1 %562 }
 0x164   :  { %v574_v52 = vmul.f32 %v1334_v28, %v563_v63 }
 0x166   :  { %v577_v7 = vadd.f32 %v574_v52, %v555_v54 }
 0x167   :  { %v567_v4 = vpop.permute.xlu1 %566 }
 0x168   :  { %v575_v55 = vmul.f32 %v1334_v28, %v567_v4 }
 0x16a   :  { %v578_v25 = vadd.f32 %v575_v55, %v556_v37 }
 0x16c   :  { %v585_v57 = vpop.permute.xlu1 %584 }
 0x16d   :  { %v596_v33 = vmul.f32 %v1339_v22, %v585_v57 }
 0x16f   :  { %v599_v1 = vadd.f32 %v596_v33, %v577_v7  ;;  %v779_v33 = vpop.permute.xlu0 %778 }
 0x170   :  { %v589_v42 = vpop.permute.xlu1 %588 }
 0x171   :  { %v597_v48 = vmul.f32 %v1339_v22, %v589_v42 }
 0x173   :  { %v600_v12 = vadd.f32 %v597_v48, %v578_v25 }
 0x175   :  { %v607_v29 = vpop.permute.xlu1 %606 }
 0x176   :  { %v618_v40 = vmul.f32 %v1345_v13, %v607_v29 }
 0x178   :  { %v621_v61 = vadd.f32 %v618_v40, %v599_v1 }
 0x179   :  { %v611_v32 = vpop.permute.xlu1 %610 }
 0x17a   :  { %v619_v46 = vmul.f32 %v1345_v13, %v611_v32 }
 0x17c   :  { %v622_v30 = vadd.f32 %v619_v46, %v600_v12 }
 0x17e   :  { %v629_v11 = vpop.permute.xlu1 %628 }
 0x17f   :  { %v640_v28 = vmul.f32 %v1352_v43, %v629_v11 }
 0x181   :  { %v643_v49 = vadd.f32 %v640_v28, %v621_v61 }
 0x182   :  { %v633_v6 = vpop.permute.xlu1 %632 }
 0x183   :  { %v641_v8 = vmul.f32 %v1352_v43, %v633_v6 }
 0x185   :  { %v644_v23 = vadd.f32 %v641_v8, %v622_v30  ;;  %v788_v30 = vld [vmem:[#allocation2 + $0xa] sm:$0x1] }
 0x187   :  { %v651_v14 = vpop.permute.xlu1 %650 }
 0x188   :  { %v662_v22 = vmul.f32 %v1361_v56, %v651_v14 }
 0x18a   :  { %v665_v19 = vadd.f32 %v662_v22, %v643_v49 }
 0x18b   :  { %v655_v16 = vpop.permute.xlu1 %654 }
 0x18c   :  { %v663_v18 = vmul.f32 %v1361_v56, %v655_v16 }
 0x18e   :  { %v666_v27 = vadd.f32 %v663_v18, %v644_v23  ;;  %v804_v23 = vsub.f32 1.0, %v788_v30 }
 0x190   :  { %v673_v41 = vpop.permute.xlu1 %672 }
 0x191   :  { %v684_v13 = vmul.f32 %v1368_v0, %v673_v41 }
 0x193   :  { %v687_v47 = vadd.f32 %v684_v13, %v665_v19  ;;  %v1446_v19 = vlaneseq }
 0x194   :  { %v677_v38 = vpop.permute.xlu1 %676 }
 0x195   :  { %v685_v51 = vmul.f32 %v1368_v0, %v677_v38  ;;  %v745_v0 = vadd.f32 %v735_v24, %v1387_v39  ;;  %v809_v16 = vand.u32 127, %v1446_v19 }
 0x197   :  { %v688_v34 = vadd.f32 %v685_v51, %v666_v27  ;;  %v748_v60 = vmax.f32 %v745_v0, 0.0  ;;  %vm810_vm1 = vcmp.lt.s32.totalorder %v809_v16, 50  ;;  %vm817_vm3 = vcmp.eq.s32.totalorder %v809_v16, 50 }
 0x199   :  { %v695_v58 = vpop.permute.xlu1 %694  ;;  %v763_v54 = vmul.f32 %v753_v36, %v748_v60 }
 0x19a   :  { %v706_v43 = vmul.f32 %v1375_v59, %v695_v58 }
 0x19c   :  { %v709_v53 = vadd.f32 %v706_v43, %v687_v47 }
 0x19d   :  { %v699_v9 = vpop.permute.xlu1 %698 }
 0x19e   :  { %v707_v21 = vmul.f32 %v1375_v59, %v699_v9 }
 0x1a0   :  { %v710_v35 = vadd.f32 %v707_v21, %v688_v34 }
 0x1a2   :  { %v717_v10 = vpop.permute.xlu1 %716 }
 0x1a3   :  { %v728_v56 = vmul.f32 %v1382_v26, %v717_v10 }
 0x1a5   :  { %v731_v2 = vadd.f32 %v728_v56, %v709_v53 }
 0x1a6   :  { %v721_v44 = vpop.permute.xlu1 %720 }
 0x1a7   :  { %v729_v5 = vmul.f32 %v1382_v26, %v721_v44 }
 0x1a9   :  { %v732_v62 = vadd.f32 %v729_v5, %v710_v35 }
 0x1ab   :  { %v739_v45 = vpop.permute.xlu1 %738 }
 0x1ac   :  { %v746_v17 = vadd.f32 %v739_v45, %v731_v2 }
 0x1ae   :  { %v749_v20 = vmax.f32 %v746_v17, 0.0 }
 0x1af   :  { %v743_v31 = vpop.permute.xlu1 %742 }
 0x1b0   :  { %v747_v50 = vadd.f32 %v743_v31, %v732_v62 }
 0x1b2   :  { %v750_v15 = vmax.f32 %v747_v50, 0.0 }
 0x1b4   :  { %v757_v59 = vpop.permute.xlu1 %756 }
 0x1b5   :  { %v764_v3 = vmul.f32 %v757_v59, %v749_v20 }
 0x1b7   :  { %v766_v37 = vadd.f32 %v764_v3, %v763_v54 }
 0x1b8   :  { %v761_v63 = vpop.permute.xlu1 %760 }
 0x1b9   :  { %v765_v52 = vmul.f32 %v761_v63, %v750_v15 }
 0x1bb   :  { %v768_v26 = vsel %vm767_vm0, %v765_v52, 0.0 }
 0x1bc   :  { %v769_v7 = vadd.f32 %v768_v26, %v766_v37 }
 0x1be   :  { %v770_v4 = vrot.slane %v769_v7, 4 }
 0x1c0   :  { %v771_v55 = vadd.f32 %v770_v4, %v769_v7 }
 0x1c2   :  { %v772_v25 = vrot.slane %v771_v55, 2 }
 0x1c4   :  { %v773_v39 = vadd.f32 %v772_v25, %v771_v55 }
 0x1c6   :  { %v774_v57 = vrot.slane %v773_v39, 1 }
 0x1c8   :  { %v775_v1 = vadd.f32 %v774_v57, %v773_v39 }
 0x1ca   :  { %v781_v42 = vadd.f32 %v779_v33, %v775_v1 }
 0x1cc   :  { %v789_v48 = vand.u32 2147483647, %v781_v42  ;;  %v799_v32 = vsub.f32 0.0, %v781_v42  ;;  %v796_v11 = vmin.f32 %v781_v42, 0.0  ;;  %v836_v51 = vmul.f32 -1.442695, %v781_v42 }
 0x1ce   :  { %v790_v12 = vsub.f32 0.0, %v789_v48  ;;  %v800_v28 = vmin.f32 %v799_v32, 0.0 }
 0x1d0   :  { %v791_v29 = vmul.f32 1.442695, %v790_v12 }
 0x1d2   :  { %917 = vpow2.f32 %v791_v29 }
 0x1df   :  { %v918_v40 = vpop.eup %917 }
 0x1e0   :  { %v793_v61 = vadd.f32 1.0, %v918_v40 }
 0x1e2   :  { %919 = vlog2.f32 %v793_v61 }
 0x1e3   :  { %921 = vpow2.f32 %v836_v51 }
 0x1ef   :  { %v920_v46 = vpop.eup %919 }
 0x1f0   :  { %v795_v49 = vmul.f32 0.6931472, %v920_v46  ;;  %v922_v34 = vpop.eup %921 }
 0x1f1   :  { %v785_v58 = vadd.f32 1.0, %v922_v34 }
 0x1f2   :  { %v797_v6 = vsub.f32 %v796_v11, %v795_v49  ;;  %v801_v8 = vsub.f32 %v800_v28, %v795_v49 }
 0x1f3   :  { %923 = vrcp.f32 %v785_v58 }
 0x1f4   :  { %v798_v14 = vmax.f32 %v797_v6, -100.0  ;;  %v802_v22 = vmax.f32 %v801_v8, -100.0 }
 0x1f6   :  { %v803_v18 = vmul.f32 %v798_v14, %v788_v30  ;;  %v805_v27 = vmul.f32 %v804_v23, %v802_v22 }
 0x1f8   :  { %v806_v41 = vadd.f32 %v805_v27, %v803_v18 }
 0x1fa   :  { %v807_v13 = vsub.f32 0.0, %v806_v41 }
 0x1fc   :  { %v811_v47 = vsel %vm810_vm1, %v807_v13, 0.0 }
 0x1fd   :  { %v813_v38 = vsel %vm812_vm2, %v811_v47, 0.0 }
 0x1fe   :  { %814 = vadd.xlane.f32.xlu1 %v813_v38 }
 0x200   :  { %v924_v9 = vpop.eup %923 }
 0x287   :  { %v815_v43 = vpop.xlane.xlu1 %814 }
 0x288   :  { %v816_v53 = vmul.f32 0.02, %v815_v43 }
 0x28a   :  { %v818_v21 = vsel %vm817_vm3, %v816_v53, %v924_v9 }
 0x28b   :  { %819 = vst [vmem:[#allocation7] sm:$0x1] %v818_v21 }
 0x28c   :  { %976 = shalt.err (!%p973_p0)
}
 0x28d   :  { %829 = dma.vmem_to_hbm [thread:$0]  %s827_s1, 16, %s1430_s2, [#allocation4]  }
 0x28e   :  { %989 = dma.done.wait [#allocation4], 16  }
 0x28f   :  { %990 = vsyncadd [#allocation4], 4294967280 }
 0x290   :  { %833 = vsyncpa [#allocation3], 1 }
 0x291   :  { %834 = vsyncpa [#allocation6], 1 }
 0x292   :  { %835 = vsyncpa [#allocation4], 1 }

</bundles_post_ra>
